<compile_context>
chip_gen: v7x
topology: tpu7x:2x2x1
jax: 0.10.0
libtpu: 0.0.40
codegen_flags: <defaults>
</compile_context>

<pallas_src>
import functools

import jax
import jax.numpy as jnp
from jax.experimental import pallas as pl
from jax.experimental.pallas import tpu as pltpu


def _round_up(n: int, m: int) -> int:
    return ((n + m - 1) // m) * m


def _next_pow2(n: int) -> int:
    return 1 << max(0, int(n) - 1).bit_length()


def mlp_act_kernel(x_ref, w1_ref, b1_ref, w2_ref, b2_ref, q_ref, act_ref, *, n_actions):
    # Hidden layer: (TB, IN) @ (IN, H) + (1, H) -> tanh   (MXU + VPU/EUP, all f32)
    h = jnp.dot(x_ref[...], w1_ref[...], preferred_element_type=jnp.float32)
    h = jnp.tanh(h + b1_ref[...])

    # Output layer, compact: (TB, H) @ (H, A) + (1, A). Only the real action
    # columns are ever computed/stored -- no 128-lane padding in HBM.
    q = jnp.dot(h, w2_ref[...], preferred_element_type=jnp.float32) + b2_ref[...]
    q_ref[...] = q.astype(q_ref.dtype)

    # Fused greedy argmax, specialized for the tiny static n_actions:
    # unrolled compare/select chain (VPU only, no cross-lane XLU reductions).
    # Strict '>' keeps the first occurrence on ties, matching jnp.argmax.
    tb = q.shape[0]
    best = q[:, 0:1]
    best_idx = jnp.zeros((tb, 1), jnp.int32)
    for j in range(1, n_actions):
        col = q[:, j:j + 1]
        better = col > best
        best = jnp.where(better, col, best)
        best_idx = jnp.where(better, j, best_idx)
    act_ref[...] = best_idx


@functools.partial(jax.jit, static_argnames=("n_actions",))
def _forward_padded(x_pad, w1, b1, w2, b2, *, n_actions):
    b_pad, in_features = x_pad.shape
    hidden = w1.shape[1]

    # Batch tile: as large as practical (per-step overhead dominates tiny compute),
    # but >=2 grid steps whenever b_pad > 16 so v7x's second TensorCore gets work.
    if b_pad <= 16:
        tb = b_pad
    else:
        tb = min(1024, b_pad // 2)
    grid = (b_pad // tb,)

    kernel = functools.partial(mlp_act_kernel, n_actions=n_actions)
    flops = 2 * b_pad * (in_features * hidden + hidden * n_actions)
    bytes_accessed = 4 * (x_pad.size + w1.size + b1.size + w2.size + b2.size
                          + b_pad * n_actions   # q output (f32)
                          + b_pad)              # action output (int32)

    return pl.pallas_call(
        kernel,
        grid=grid,
        in_specs=[
            pl.BlockSpec((tb, in_features), lambda i: (i, 0)),      # x: new tile per step
            pl.BlockSpec((in_features, hidden), lambda i: (0, 0)),  # weights stay resident
            pl.BlockSpec((1, hidden), lambda i: (0, 0)),
            pl.BlockSpec((hidden, n_actions), lambda i: (0, 0)),
            pl.BlockSpec((1, n_actions), lambda i: (0, 0)),
        ],
        out_specs=(
            pl.BlockSpec((tb, n_actions), lambda i: (i, 0)),        # compact Q tile
            pl.BlockSpec((tb, 1), lambda i: (i, 0)),                # compact action column
        ),
        out_shape=(
            jax.ShapeDtypeStruct((b_pad, n_actions), jnp.float32),
            jax.ShapeDtypeStruct((b_pad, 1), jnp.int32),
        ),
        compiler_params=pltpu.CompilerParams(dimension_semantics=("parallel",)),
        cost_estimate=pl.CostEstimate(
            flops=flops,
            transcendentals=b_pad * hidden,
            bytes_accessed=bytes_accessed,
        ),
    )(x_pad, w1, b1, w2, b2)


def prepare_params(w1, b1, w2, b2):
    """Canonicalize parameters (f32, row-vector biases). No padding needed."""
    n_actions = int(w2.shape[1])
    return (jnp.asarray(w1, jnp.float32),
            jnp.asarray(b1, jnp.float32).reshape(1, -1),
            jnp.asarray(w2, jnp.float32),
            jnp.asarray(b2, jnp.float32).reshape(1, -1),
            n_actions)


def network_forward(x, params):
    """Forward pass. Returns (q_values (B, n_actions), greedy actions (B,) int32)."""
    w1, b1, w2, b2, n_actions = params
    x = jnp.asarray(x, jnp.float32)
    if x.ndim == 1:
        x = x.reshape(1, -1)
    b = x.shape[0]
    # Bucket the padded batch to a power of two (>=8): bounded set of compiles,
    # and b_pad is always divisible by the tile chosen in _forward_padded.
    b_pad = max(8, _next_pow2(b))
    if b_pad != b:
        x = jnp.pad(x, ((0, b_pad - b), (0, 0)))
    q_pad, act_pad = _forward_padded(x, w1, b1, w2, b2, n_actions=n_actions)
    return q_pad[:b], act_pad[:b, 0]


def network_act(obs, params):
    """Greedy action for a single observation (mirrors Network.act).

    Returns a device int32 scalar -- no forced host sync. Call int(...) on the
    result only when a Python int is actually required.
    """
    obs = jnp.asarray(obs, jnp.float32).reshape(1, -1)
    _, actions = network_forward(obs, params)
    return actions[0]


def init_params(key, in_features=4, hidden=64, n_actions=2):
    # Deterministic init mimicking PyTorch's default Linear init:
    # U(-1/sqrt(fan_in), 1/sqrt(fan_in)) for weights and biases.
    k1, k2, k3, k4 = jax.random.split(key, 4)
    bound1 = 1.0 / jnp.sqrt(jnp.float32(in_features))
    bound2 = 1.0 / jnp.sqrt(jnp.float32(hidden))
    w1 = jax.random.uniform(k1, (in_features, hidden), jnp.float32, -bound1, bound1)
    b1 = jax.random.uniform(k2, (1, hidden), jnp.float32, -bound1, bound1)
    w2 = jax.random.uniform(k3, (hidden, n_actions), jnp.float32, -bound2, bound2)
    b2 = jax.random.uniform(k4, (1, n_actions), jnp.float32, -bound2, bound2)
    return w1, b1, w2, b2


def reference_forward(x, w1, b1, w2, b2):
    h = jnp.tanh(x @ w1 + b1)
    return h @ w2 + b2


def _check_actions_vs_reference(actions, q_ref, tol=1e-4):
    """Argmax check that tolerates ULP-level ties between implementations."""
    top2 = jnp.sort(q_ref, axis=1)[:, -2:]
    gap = top2[:, 1] - top2[:, 0]
    clear = gap > tol
    ref_act = jnp.argmax(q_ref, axis=1)
    return bool(jnp.all(jnp.where(clear, actions == ref_act, True)))


if __name__ == "__main__":
    key = jax.random.PRNGKey(0)
    k_params, k_x, k_x2 = jax.random.split(key, 3)

    # CartPole-like: observation dim = 4, actions = 2.
    B, IN, H, A = 2, 4, 64, 2
    w1, b1, w2, b2 = init_params(k_params, IN, H, A)
    params = prepare_params(w1, b1, w2, b2)

    # Small batch (B=2): single grid step, padded to 8 rows internally.
    x = jax.random.normal(k_x, (B, IN), jnp.float32)
    q, actions = network_forward(x, params)
    jax.block_until_ready((q, actions))

    q_ref = reference_forward(x, w1, b1, w2, b2)
    assert q.shape == (B, A)
    assert jnp.allclose(q, q_ref, atol=1e-5, rtol=1e-5)
    # Exact self-consistency: the fused argmax must match argmax of the kernel's own Q.
    assert jnp.array_equal(actions, jnp.argmax(q, axis=1))
    # Cross-check against the XLA reference, ignoring ULP-level ties.
    assert _check_actions_vs_reference(actions, q_ref)

    # Larger batch (B=200): pads to 256 rows -> 2 grid steps of 128 rows
    # (exercises the multi-step batch grid, resident weights, and row padding).
    B2 = 200
    x2 = jax.random.normal(k_x2, (B2, IN), jnp.float32)
    q2, actions2 = network_forward(x2, params)
    jax.block_until_ready((q2, actions2))
    q2_ref = reference_forward(x2, w1, b1, w2, b2)
    assert q2.shape == (B2, A)
    assert jnp.allclose(q2, q2_ref, atol=1e-5, rtol=1e-5)
    assert jnp.array_equal(actions2, jnp.argmax(q2, axis=1))
    assert _check_actions_vs_reference(actions2, q2_ref)

    # Single-obs greedy action (like Network.act) using the fused argmax output.
    action_dev = network_act(x[0], params)          # device scalar, no host sync here
    jax.block_until_ready(action_dev)
    action = int(action_dev)                        # explicit host read only for the test
    assert 0 <= action < A
    assert action == int(jnp.argmax(q[0]))

    print("KERNEL_OK")
</pallas_src>

<mosaic_0001>
module attributes {stable_mosaic.version = 11 : i64} {
  func.func @mlp_act_kernel(%arg0: i32, %arg1: memref<8x4xf32, #tpu.memory_space<vmem>>, %arg2: memref<4x64xf32, #tpu.memory_space<vmem>>, %arg3: memref<1x64xf32, #tpu.memory_space<vmem>>, %arg4: memref<64x2xf32, #tpu.memory_space<vmem>>, %arg5: memref<1x2xf32, #tpu.memory_space<vmem>>, %arg6: memref<8x2xf32, #tpu.memory_space<vmem>>, %arg7: memref<8x1xi32, #tpu.memory_space<vmem>>) attributes {dimension_semantics = [#tpu.dimension_semantics<parallel>], iteration_bounds = array<i64: 1>, scalar_prefetch = 0 : i64, scratch_operands = 0 : i64, tpu.core_type = #tpu.core_type<tc>, window_params = [{transform_indices = @transform_0, window_bounds = array<i64: 8, 4>}, {pipeline_mode = #tpu.pipeline_mode<synchronous>, transform_indices = @transform_1, window_bounds = array<i64: 4, 64>}, {pipeline_mode = #tpu.pipeline_mode<synchronous>, transform_indices = @transform_2, window_bounds = array<i64: 1, 64>}, {pipeline_mode = #tpu.pipeline_mode<synchronous>, transform_indices = @transform_3, window_bounds = array<i64: 64, 2>}, {pipeline_mode = #tpu.pipeline_mode<synchronous>, transform_indices = @transform_4, window_bounds = array<i64: 1, 2>}, {transform_indices = @transform_5, window_bounds = array<i64: 8, 2>}, {transform_indices = @transform_6, window_bounds = array<i64: 8, 1>}]} {
    %c0 = arith.constant 0 : index
    %c0_0 = arith.constant 0 : index
    %0 = vector.load %arg1[%c0, %c0_0] : memref<8x4xf32, #tpu.memory_space<vmem>>, vector<8x4xf32>
    %c0_1 = arith.constant 0 : index
    %c0_2 = arith.constant 0 : index
    %1 = vector.load %arg2[%c0_1, %c0_2] : memref<4x64xf32, #tpu.memory_space<vmem>>, vector<4x64xf32>
    %cst = arith.constant dense<0.000000e+00> : vector<8x64xf32>
    %2 = tpu.matmul %0, %1, %cst {dimension_numbers = #tpu.dot_dimension_numbers<[1], [0], [0], [1], [0, 0, 1, 1], [], []>} : vector<8x4xf32>, vector<4x64xf32>, vector<8x64xf32> -> vector<8x64xf32>
    %c0_3 = arith.constant 0 : index
    %c0_4 = arith.constant 0 : index
    %3 = vector.load %arg3[%c0_3, %c0_4] : memref<1x64xf32, #tpu.memory_space<vmem>>, vector<1x64xf32>
    %4 = vector.broadcast %3 : vector<1x64xf32> to vector<8x64xf32>
    %5 = arith.addf %2, %4 : vector<8x64xf32>
    %6 = math.tanh %5 : vector<8x64xf32>
    %c0_5 = arith.constant 0 : index
    %c0_6 = arith.constant 0 : index
    %7 = vector.load %arg4[%c0_5, %c0_6] : memref<64x2xf32, #tpu.memory_space<vmem>>, vector<64x2xf32>
    %cst_7 = arith.constant dense<0.000000e+00> : vector<8x2xf32>
    %8 = tpu.matmul %6, %7, %cst_7 {dimension_numbers = #tpu.dot_dimension_numbers<[1], [0], [0], [1], [0, 0, 1, 1], [], []>} : vector<8x64xf32>, vector<64x2xf32>, vector<8x2xf32> -> vector<8x2xf32>
    %c0_8 = arith.constant 0 : index
    %c0_9 = arith.constant 0 : index
    %9 = vector.load %arg5[%c0_8, %c0_9] : memref<1x2xf32, #tpu.memory_space<vmem>>, vector<1x2xf32>
    %10 = vector.broadcast %9 : vector<1x2xf32> to vector<8x2xf32>
    %11 = arith.addf %8, %10 : vector<8x2xf32>
    %c0_10 = arith.constant 0 : index
    %c0_11 = arith.constant 0 : index
    %12 = vector.load %arg6[%c0_10, %c0_11] : memref<8x2xf32, #tpu.memory_space<vmem>>, vector<8x2xf32>
    tpu.vector_store %arg6[%c0_10, %c0_11], %11 {strides = array<i32>} : memref<8x2xf32, #tpu.memory_space<vmem>>, vector<8x2xf32>,
    %13 = vector.extract_strided_slice %11 {offsets = [0, 0], sizes = [8, 1], strides = [1, 1]} : vector<8x2xf32> to vector<8x1xf32>
    %c0_i32 = arith.constant 0 : i32
    %14 = vector.broadcast %c0_i32 : i32 to vector<8x1xi32>
    %15 = vector.extract_strided_slice %11 {offsets = [0, 1], sizes = [8, 1], strides = [1, 1]} : vector<8x2xf32> to vector<8x1xf32>
    %16 = arith.cmpf ogt, %15, %13 : vector<8x1xf32>
    %c1_i32 = arith.constant 1 : i32
    %17 = vector.broadcast %c1_i32 : i32 to vector<8x1xi32>
    %18 = arith.select %16, %17, %14 : vector<8x1xi1>, vector<8x1xi32>
    %c0_12 = arith.constant 0 : index
    %c0_13 = arith.constant 0 : index
    %19 = vector.load %arg7[%c0_12, %c0_13] : memref<8x1xi32, #tpu.memory_space<vmem>>, vector<8x1xi32>
    tpu.vector_store %arg7[%c0_12, %c0_13], %18 {strides = array<i32>} : memref<8x1xi32, #tpu.memory_space<vmem>>, vector<8x1xi32>,
    return
  }
  func.func @transform_0(%arg0: i32) -> (i32, i32) {
    %c0_i32 = arith.constant 0 : i32
    %c0_i32_0 = arith.constant 0 : i32
    return %arg0, %c0_i32 : i32, i32
  }
  func.func @transform_1(%arg0: i32) -> (i32, i32) {
    %c0_i32 = arith.constant 0 : i32
    %c0_i32_0 = arith.constant 0 : i32
    %c0_i32_1 = arith.constant 0 : i32
    return %c0_i32, %c0_i32_0 : i32, i32
  }
  func.func @transform_2(%arg0: i32) -> (i32, i32) {
    %c0_i32 = arith.constant 0 : i32
    %c0_i32_0 = arith.constant 0 : i32
    %c0_i32_1 = arith.constant 0 : i32
    return %c0_i32, %c0_i32_0 : i32, i32
  }
  func.func @transform_3(%arg0: i32) -> (i32, i32) {
    %c0_i32 = arith.constant 0 : i32
    %c0_i32_0 = arith.constant 0 : i32
    %c0_i32_1 = arith.constant 0 : i32
    return %c0_i32, %c0_i32_0 : i32, i32
  }
  func.func @transform_4(%arg0: i32) -> (i32, i32) {
    %c0_i32 = arith.constant 0 : i32
    %c0_i32_0 = arith.constant 0 : i32
    %c0_i32_1 = arith.constant 0 : i32
    return %c0_i32, %c0_i32_0 : i32, i32
  }
  func.func @transform_5(%arg0: i32) -> (i32, i32) {
    %c0_i32 = arith.constant 0 : i32
    %c0_i32_0 = arith.constant 0 : i32
    return %arg0, %c0_i32 : i32, i32
  }
  func.func @transform_6(%arg0: i32) -> (i32, i32) {
    %c0_i32 = arith.constant 0 : i32
    %c0_i32_0 = arith.constant 0 : i32
    return %arg0, %c0_i32 : i32, i32
  }
}

</mosaic_0001>

<bundles_post_ra>
// kernel: _forward_padded.1
= control target key start
LH: loop header
LB: loop body
LE: loop exit
PB: predicated region body
PF: predicated region fallthrough
CT: control target
= control target key end

     0   :  { %vm35_vm0 = vcmask 1043456   ;;  %vm31_vm1 = vcmask 31744   ;;  %v279_v0 = vmov 0.0   ;;  %vm280_vm2 = vmmov 0   ;;  %s284_s20 = smov 127   ;;  %s362_s1 = inlined_call_operand.vmem [shape: f32[4,64], index: 1, kind: input, shape index: {}]   ;;  %s363_s0 = inlined_call_operand.vmem [shape: f32[8,4], index: 0, kind: input, shape index: {}]   ;;  %s364_s3 = inlined_call_operand.vmem [shape: f32[64,2], index: 3, kind: input, shape index: {}]   ;;  %s365_s2 = inlined_call_operand.vmem [shape: f32[1,64], index: 2, kind: input, shape index: {}]   ;;  %s366_s4 = inlined_call_operand.vmem [shape: f32[1,2], index: 4, kind: input, shape index: {}]   ;;  %s367_s5 = inlined_call_operand.vmem [shape: f32[8,2], index: 5, kind: output, shape index: {0}]   ;;  %s368_s6 = inlined_call_operand.vmem [shape: s32[8,1], index: 6, kind: output, shape index: {1}]  }
   0x1   :  { %235 = vmatprep.subr.mxu0 %v279_v0  ;;  %v23_v1 = vld [vmem:[%s362_s1] sm:$0xf]  ;;  %237 = vmatprep.mubr.msk.f32.mxu0 %vm280_vm2, %v279_v0  ;;  %v281_v4 = vmov 0.0|0.0   ;;  %v111_v5 = vld [vmem:[%s364_s3 + $0x8] sm:$0xff]  ;;  %v112_v7 = vld [vmem:[%s364_s3 + $0x10] sm:$0xff]  ;;  %vm125_vm3 = vcmask 523264  }
   0x2   :  { %v22_v2 = vld [vmem:[%s363_s0] sm:$0xff]  ;;  %236 = vmatpush3.msk.msra.mxu0 %vm35_vm0, %v23_v1  ;;  %259 = vmatprep.subr.bf16.mxu1 %v281_v4  ;;  %v113_v8 = vld [vmem:[%s364_s3 + $0x18] sm:$0xff]  ;;  %v115_v11 = vld [vmem:[%s364_s3 + $0x28] sm:$0xff]  ;;  %vm199_vm4 = vcmask 15360   ;;  %v283_v26 = vmov 0   ;;  %vm209_vm6 = vcmask 7168  }
   0x3   :  { %v110_v3 = vld [vmem:[%s364_s3] sm:$0xff]  ;;  %238 = vmatmul.mubr.msk.f32.vlgmr.msra.gmra.mrb[0].mxu0 %vm31_vm1, %v22_v2  ;;  %256 = vmatprep.mubr.msk.f32.mxu1 %vm280_vm2, %v279_v0  ;;  %v263_v9 = vpack.c.bf16 %v113_v8, %v112_v7  ;;  %v116_v13 = vld [vmem:[%s364_s3 + $0x30] sm:$0xff]  ;;  %v117_v14 = vld [vmem:[%s364_s3 + $0x38] sm:$0xff] }
   0x4   :  { %v260_v6 = vpack.c.bf16 %v111_v5, %v110_v3  ;;  %v114_v10 = vld [vmem:[%s364_s3 + $0x20] sm:$0xff]  ;;  %v269_v15 = vpack.c.bf16 %v117_v14, %v116_v13 }
   0x5   :  { %v266_v12 = vpack.c.bf16 %v115_v11, %v114_v10  ;;  %v219_v16 = vld [vmem:[%s365_s2] ss:$0 sm:$0xff]  ;;  %s282_s2 = smov 1  }
   0x6   :  { %261 = vmatpush3.bf16.msra.mxu1 %v260_v6  ;;  %v222_v21 = vld [vmem:[%s366_s4] ss:$0 sm:$0xff] }
   0x7   :  { %262 = vmatprep.subr.bf16.mxu1 %v281_v4 }
   0xa   :  { %264 = vmatpush3.bf16.msra.mxu1 %v263_v9 }
   0xb   :  { %265 = vmatprep.subr.bf16.mxu1 %v281_v4 }
   0xe   :  { %267 = vmatpush3.bf16.msra.mxu1 %v266_v12 }
   0xf   :  { %268 = vmatprep.subr.bf16.mxu1 %v281_v4 }
  0x12   :  { %270 = vmatpush3.bf16.msra.mxu1 %v269_v15 }
  0xd6   :  { %v105_v17 = vpop.f32.mrb[0].mxu0 }
  0xd7   :  { %v106_v18 = vadd.f32 %v219_v16, %v105_v17  ;;  %v239_v19 = vpop.f32.mrb[1].mxu0 }
  0xd9   :  { %277 = vtanh.f32 %v106_v18 }
  0xe3   :  { %v278_v20 = vpop.eup %277 }
  0xe4   :  { %257 = vmatmul.mubr.msk.f32.vlgmr.msra.gmra.mrb[0].mxu1 %vm125_vm3, %v278_v20 }
 0x1b7   :  { %v195_v22 = vpop.f32.mrb[0].mxu1 }
 0x1b8   :  { %v196_v23 = vadd.f32 %v222_v21, %v195_v22  ;;  %v258_v24 = vpop.f32.mrb[1].mxu1 }
 0x1ba   :  { %200 = vst.msk [vmem:[%s367_s5] sm:$0xff] %vm199_vm4, %v196_v23  ;;  %202 = vrot.lane.b32.xlu0 %v196_v23, %s282_s2 }
 0x22c   :  { %v203_v25 = vpop.permute.xlu0 %202 }
 0x22d   :  { %vm205_vm5 = vcmp.gt.f32.partialorder %v196_v23, %v203_v25 }
 0x22e   :  { %v206_v27 = vsel %vm205_vm5, 1, %v283_v26 }
 0x22f   :  { %207 = vrot.lane.b32.xlu0 %v206_v27, %s284_s20 }
 0x2a1   :  { %v208_v28 = vpop.permute.xlu0 %207 }
 0x2a2   :  { %210 = vst.msk [vmem:[%s368_s6] sm:$0xff] %vm209_vm6, %v208_v28 }

</bundles_post_ra>
